<compile_context>
chip_gen: v7x
topology: tpu7x:2x2x1
jax: 0.10.0
libtpu: 0.0.40
codegen_flags: <defaults>
</compile_context>

<pallas_src>
import jax
import jax.numpy as jnp
from jax.experimental import pallas as pl
from jax.experimental.pallas import tpu as pltpu

N_ITER = 5          # crfseg.CRF default
FILTER_SIZE = 11    # crfseg.CRF default


def crf_forward_kernel(emb_ref, wproj_ref, bproj_ref, g_ref, out_ref):
    """One batch item per grid step.

    emb_ref  : (1, E, H*W) bf16  image embedding, lane-dense spatial axis
    wproj_ref: (C, E)      bf16  stand-in 1x1-conv head weight (VMEM)
    bproj_ref: (C, 1)      f32   stand-in head bias            (VMEM)
    g_ref    : (H*W, H*W)  bf16  sw * (KH kron KW): flattened separable
                                 zero-centre Gaussian message-passing operator
    out_ref  : (1, C, H*W) f32   CRF logits
    """
    # ---- stand-in `self.net`: single MXU matmul over embedding channels ----
    # TODO(synk): the real `self.net` is an arbitrary external backbone (e.g. a
    # SAM decoder returning {'masks': ...}); a deterministic 1x1-conv head
    # stands in for it.
    head = jnp.dot(wproj_ref[...], emb_ref[0],
                   preferred_element_type=jnp.float32)          # (C, HW) f32
    unary = head + bproj_ref[...]   # negative unary potentials (crfseg: x.clone())

    g = g_ref[...]                  # (HW, HW) bf16, smoothness_weight folded in
    x = unary

    # ---- CRF mean-field iterations (returns='logits') ----
    for _ in range(N_ITER):
        # softmax over the class axis (axis 0); elementwise work is lane-dense
        # over H*W, single approx reciprocal on the EUP instead of C divisions.
        m = jnp.max(x, axis=0, keepdims=True)
        e = jnp.exp(x - m)
        inv = pl.reciprocal(jnp.sum(e, axis=0, keepdims=True), approx=True)
        p = (e * inv).astype(jnp.bfloat16)                      # (C, HW)

        # class-batched message passing: one bf16 MXU matmul, f32 accumulate;
        # equals sw * KH @ p_c @ KW^T for every class c at once.
        z = jnp.dot(p, g, preferred_element_type=jnp.float32)   # (C, HW) f32

        # compatibility matrix = -(i==j) = -I  =>  x <- unary + sw*smooth(p)
        x = unary + z

    out_ref[0] = x.astype(out_ref.dtype)


def gaussian_band_matrix(n, filter_size=FILTER_SIZE, inv_theta=1.0, spacing=1.0):
    """Banded matrix K with K[i, j] = g[j - i + half], |i-j| <= half, g[half]=0.

    Matches crfseg's zero-padded 1-D conv with a zero-centre, UNNORMALIZED
    Gaussian kernel: y[i] = sum_j K[i, j] x[j].  K is symmetric.
    """
    half = filter_size // 2
    d = spacing * jnp.arange(-half, half + 1, dtype=jnp.float32)
    gk = jnp.exp(-(d * inv_theta) ** 2 / 2.0)
    gk = gk.at[half].set(0.0)                    # zero out the centre tap
    i = jnp.arange(n)[:, None]
    j = jnp.arange(n)[None, :]
    off = j - i
    band = jnp.where(jnp.abs(off) <= half,
                     gk[jnp.clip(off + half, 0, filter_size - 1)],
                     0.0)
    return band.astype(jnp.float32)


def crf_augmented_forward(emb, wproj, bproj, *, smoothness_weight=1.0,
                          smoothness_theta=1.0, multimask_output=True,
                          image_size=512):
    """CRFAugmented.forward: net head + crfseg.CRF, fused into one Pallas kernel."""
    del multimask_output, image_size  # net stand-in keeps the spatial size
    B, E, H, W = emb.shape
    C = wproj.shape[0]
    HW = H * W
    # Note: crfseg's n_classes==1 binary branch is not exercised here because
    # multimask_output=True implies C > 1.

    inv_theta = 1.0 / smoothness_theta
    kh = gaussian_band_matrix(H, inv_theta=inv_theta)   # symmetric (H, H)
    kw = gaussian_band_matrix(W, inv_theta=inv_theta)   # symmetric (W, W)
    # Fold smoothness_weight and both separable 1-D passes into one flattened
    # operator on the (h-major) H*W plane:  z_flat = p_flat @ G  ==
    # sw * KH @ p @ KW^T.  bf16 feed, f32 accumulation in-kernel.
    g = (smoothness_weight * jnp.kron(kh, kw)).astype(jnp.bfloat16)   # (HW, HW)

    # Lane-dense, bf16 inputs for the head matmul (halves HBM traffic for emb).
    emb_flat = emb.reshape(B, E, HW).astype(jnp.bfloat16)
    wproj_b = wproj.astype(jnp.bfloat16)
    bproj_col = bproj.reshape(C, 1).astype(jnp.float32)

    # TODO(synk): with B=2 and grid=(B,), a v7x (2 TCs) gets one step per core;
    # real image sizes should add a spatial-tile grid axis (halo'd) so each
    # core has several pipelined steps.
    out_flat = pl.pallas_call(
        crf_forward_kernel,
        out_shape=jax.ShapeDtypeStruct((B, C, HW), jnp.float32),
        grid=(B,),
        in_specs=[
            pl.BlockSpec((1, E, HW), lambda b: (b, 0, 0)),
            pl.BlockSpec((C, E), lambda b: (0, 0)),      # VMEM (not SMEM)
            pl.BlockSpec((C, 1), lambda b: (0, 0)),      # VMEM
            pl.BlockSpec((HW, HW), lambda b: (0, 0)),
        ],
        out_specs=pl.BlockSpec((1, C, HW), lambda b: (b, 0, 0)),
        compiler_params=pltpu.CompilerParams(
            dimension_semantics=("parallel",),
            vmem_limit_bytes=48 * 1024 * 1024),
    )(emb_flat, wproj_b, bproj_col, g)

    return {"masks": out_flat.reshape(B, C, H, W)}


if __name__ == "__main__":
    B, E, H, W, C = 2, 8, 16, 16, 3  # small shapes; C=3 ~ multimask output

    key = jax.random.PRNGKey(0)
    k_emb, k_w, k_b = jax.random.split(key, 3)
    emb = jax.random.normal(k_emb, (B, E, H, W), dtype=jnp.float32)
    # deterministic stand-in net-head parameters
    wproj = 0.5 * jax.random.normal(k_w, (C, E), dtype=jnp.float32)
    bproj = 0.1 * jax.random.normal(k_b, (C,), dtype=jnp.float32)

    result = crf_augmented_forward(emb, wproj, bproj,
                                   multimask_output=True, image_size=512)
    masks = jax.block_until_ready(result["masks"])

    assert masks.shape == (B, C, H, W), masks.shape
    assert masks.dtype == jnp.float32
    assert bool(jnp.all(jnp.isfinite(masks)))
    print("KERNEL_OK")
</pallas_src>

<mosaic_0001>
module attributes {stable_mosaic.version = 11 : i64} {
  func.func @crf_forward_kernel(%arg0: i32, %arg1: memref<1x8x256xbf16, #tpu.memory_space<vmem>>, %arg2: memref<3x8xbf16, #tpu.memory_space<vmem>>, %arg3: memref<3x1xf32, #tpu.memory_space<vmem>>, %arg4: memref<256x256xbf16, #tpu.memory_space<vmem>>, %arg5: memref<1x3x256xf32, #tpu.memory_space<vmem>>) attributes {dimension_semantics = [#tpu.dimension_semantics<parallel>], iteration_bounds = array<i64: 2>, scalar_prefetch = 0 : i64, scratch_operands = 0 : i64, tpu.core_type = #tpu.core_type<tc>, window_params = [{transform_indices = @transform_0, window_bounds = array<i64: 1, 8, 256>}, {pipeline_mode = #tpu.pipeline_mode<synchronous>, transform_indices = @transform_1, window_bounds = array<i64: 3, 8>}, {pipeline_mode = #tpu.pipeline_mode<synchronous>, transform_indices = @transform_2, window_bounds = array<i64: 3, 1>}, {pipeline_mode = #tpu.pipeline_mode<synchronous>, transform_indices = @transform_3, window_bounds = array<i64: 256, 256>}, {transform_indices = @transform_4, window_bounds = array<i64: 1, 3, 256>}]} {
    %c0 = arith.constant 0 : index
    %c0_0 = arith.constant 0 : index
    %0 = vector.load %arg2[%c0, %c0_0] : memref<3x8xbf16, #tpu.memory_space<vmem>>, vector<3x8xbf16>
    %c0_1 = arith.constant 0 : index
    %c0_2 = arith.constant 0 : index
    %c0_3 = arith.constant 0 : index
    %1 = vector.load %arg1[%c0_1, %c0_2, %c0_3] : memref<1x8x256xbf16, #tpu.memory_space<vmem>>, vector<1x8x256xbf16>
    %2 = vector.shape_cast %1 : vector<1x8x256xbf16> to vector<8x256xbf16>
    %cst = arith.constant dense<0.000000e+00> : vector<3x256xf32>
    %3 = tpu.matmul %0, %2, %cst {dimension_numbers = #tpu.dot_dimension_numbers<[1], [0], [0], [1], [0, 0, 1, 1], [], []>} : vector<3x8xbf16>, vector<8x256xbf16>, vector<3x256xf32> -> vector<3x256xf32>
    %c0_4 = arith.constant 0 : index
    %c0_5 = arith.constant 0 : index
    %4 = vector.load %arg3[%c0_4, %c0_5] : memref<3x1xf32, #tpu.memory_space<vmem>>, vector<3x1xf32>
    %5 = vector.broadcast %4 : vector<3x1xf32> to vector<3x256xf32>
    %6 = arith.addf %3, %5 : vector<3x256xf32>
    %c0_6 = arith.constant 0 : index
    %c0_7 = arith.constant 0 : index
    %7 = vector.load %arg4[%c0_6, %c0_7] : memref<256x256xbf16, #tpu.memory_space<vmem>>, vector<256x256xbf16>
    %cst_8 = arith.constant dense<0xFF800000> : vector<256xf32>
    %8 = vector.multi_reduction <maximumf>, %6, %cst_8 [0] : vector<3x256xf32> to vector<256xf32>
    %9 = vector.shape_cast %8 : vector<256xf32> to vector<1x256xf32>
    %10 = vector.broadcast %9 : vector<1x256xf32> to vector<3x256xf32>
    %11 = arith.subf %6, %10 : vector<3x256xf32>
    %12 = math.exp %11 : vector<3x256xf32>
    %cst_9 = arith.constant dense<0.000000e+00> : vector<256xf32>
    %13 = vector.multi_reduction <add>, %12, %cst_9 [0] : vector<3x256xf32> to vector<256xf32>
    %14 = vector.shape_cast %13 : vector<256xf32> to vector<1x256xf32>
    %15 = tpu.reciprocal %14 {approx = true} : vector<1x256xf32> -> vector<1x256xf32>
    %16 = vector.broadcast %15 : vector<1x256xf32> to vector<3x256xf32>
    %17 = arith.mulf %12, %16 : vector<3x256xf32>
    %18 = arith.truncf %17 : vector<3x256xf32> to vector<3x256xbf16>
    %cst_10 = arith.constant dense<0.000000e+00> : vector<3x256xf32>
    %19 = tpu.matmul %18, %7, %cst_10 {dimension_numbers = #tpu.dot_dimension_numbers<[1], [0], [0], [1], [0, 0, 1, 1], [], []>} : vector<3x256xbf16>, vector<256x256xbf16>, vector<3x256xf32> -> vector<3x256xf32>
    %20 = arith.addf %6, %19 : vector<3x256xf32>
    %cst_11 = arith.constant dense<0xFF800000> : vector<256xf32>
    %21 = vector.multi_reduction <maximumf>, %20, %cst_11 [0] : vector<3x256xf32> to vector<256xf32>
    %22 = vector.shape_cast %21 : vector<256xf32> to vector<1x256xf32>
    %23 = vector.broadcast %22 : vector<1x256xf32> to vector<3x256xf32>
    %24 = arith.subf %20, %23 : vector<3x256xf32>
    %25 = math.exp %24 : vector<3x256xf32>
    %cst_12 = arith.constant dense<0.000000e+00> : vector<256xf32>
    %26 = vector.multi_reduction <add>, %25, %cst_12 [0] : vector<3x256xf32> to vector<256xf32>
    %27 = vector.shape_cast %26 : vector<256xf32> to vector<1x256xf32>
    %28 = tpu.reciprocal %27 {approx = true} : vector<1x256xf32> -> vector<1x256xf32>
    %29 = vector.broadcast %28 : vector<1x256xf32> to vector<3x256xf32>
    %30 = arith.mulf %25, %29 : vector<3x256xf32>
    %31 = arith.truncf %30 : vector<3x256xf32> to vector<3x256xbf16>
    %cst_13 = arith.constant dense<0.000000e+00> : vector<3x256xf32>
    %32 = tpu.matmul %31, %7, %cst_13 {dimension_numbers = #tpu.dot_dimension_numbers<[1], [0], [0], [1], [0, 0, 1, 1], [], []>} : vector<3x256xbf16>, vector<256x256xbf16>, vector<3x256xf32> -> vector<3x256xf32>
    %33 = arith.addf %6, %32 : vector<3x256xf32>
    %cst_14 = arith.constant dense<0xFF800000> : vector<256xf32>
    %34 = vector.multi_reduction <maximumf>, %33, %cst_14 [0] : vector<3x256xf32> to vector<256xf32>
    %35 = vector.shape_cast %34 : vector<256xf32> to vector<1x256xf32>
    %36 = vector.broadcast %35 : vector<1x256xf32> to vector<3x256xf32>
    %37 = arith.subf %33, %36 : vector<3x256xf32>
    %38 = math.exp %37 : vector<3x256xf32>
    %cst_15 = arith.constant dense<0.000000e+00> : vector<256xf32>
    %39 = vector.multi_reduction <add>, %38, %cst_15 [0] : vector<3x256xf32> to vector<256xf32>
    %40 = vector.shape_cast %39 : vector<256xf32> to vector<1x256xf32>
    %41 = tpu.reciprocal %40 {approx = true} : vector<1x256xf32> -> vector<1x256xf32>
    %42 = vector.broadcast %41 : vector<1x256xf32> to vector<3x256xf32>
    %43 = arith.mulf %38, %42 : vector<3x256xf32>
    %44 = arith.truncf %43 : vector<3x256xf32> to vector<3x256xbf16>
    %cst_16 = arith.constant dense<0.000000e+00> : vector<3x256xf32>
    %45 = tpu.matmul %44, %7, %cst_16 {dimension_numbers = #tpu.dot_dimension_numbers<[1], [0], [0], [1], [0, 0, 1, 1], [], []>} : vector<3x256xbf16>, vector<256x256xbf16>, vector<3x256xf32> -> vector<3x256xf32>
    %46 = arith.addf %6, %45 : vector<3x256xf32>
    %cst_17 = arith.constant dense<0xFF800000> : vector<256xf32>
    %47 = vector.multi_reduction <maximumf>, %46, %cst_17 [0] : vector<3x256xf32> to vector<256xf32>
    %48 = vector.shape_cast %47 : vector<256xf32> to vector<1x256xf32>
    %49 = vector.broadcast %48 : vector<1x256xf32> to vector<3x256xf32>
    %50 = arith.subf %46, %49 : vector<3x256xf32>
    %51 = math.exp %50 : vector<3x256xf32>
    %cst_18 = arith.constant dense<0.000000e+00> : vector<256xf32>
    %52 = vector.multi_reduction <add>, %51, %cst_18 [0] : vector<3x256xf32> to vector<256xf32>
    %53 = vector.shape_cast %52 : vector<256xf32> to vector<1x256xf32>
    %54 = tpu.reciprocal %53 {approx = true} : vector<1x256xf32> -> vector<1x256xf32>
    %55 = vector.broadcast %54 : vector<1x256xf32> to vector<3x256xf32>
    %56 = arith.mulf %51, %55 : vector<3x256xf32>
    %57 = arith.truncf %56 : vector<3x256xf32> to vector<3x256xbf16>
    %cst_19 = arith.constant dense<0.000000e+00> : vector<3x256xf32>
    %58 = tpu.matmul %57, %7, %cst_19 {dimension_numbers = #tpu.dot_dimension_numbers<[1], [0], [0], [1], [0, 0, 1, 1], [], []>} : vector<3x256xbf16>, vector<256x256xbf16>, vector<3x256xf32> -> vector<3x256xf32>
    %59 = arith.addf %6, %58 : vector<3x256xf32>
    %cst_20 = arith.constant dense<0xFF800000> : vector<256xf32>
    %60 = vector.multi_reduction <maximumf>, %59, %cst_20 [0] : vector<3x256xf32> to vector<256xf32>
    %61 = vector.shape_cast %60 : vector<256xf32> to vector<1x256xf32>
    %62 = vector.broadcast %61 : vector<1x256xf32> to vector<3x256xf32>
    %63 = arith.subf %59, %62 : vector<3x256xf32>
    %64 = math.exp %63 : vector<3x256xf32>
    %cst_21 = arith.constant dense<0.000000e+00> : vector<256xf32>
    %65 = vector.multi_reduction <add>, %64, %cst_21 [0] : vector<3x256xf32> to vector<256xf32>
    %66 = vector.shape_cast %65 : vector<256xf32> to vector<1x256xf32>
    %67 = tpu.reciprocal %66 {approx = true} : vector<1x256xf32> -> vector<1x256xf32>
    %68 = vector.broadcast %67 : vector<1x256xf32> to vector<3x256xf32>
    %69 = arith.mulf %64, %68 : vector<3x256xf32>
    %70 = arith.truncf %69 : vector<3x256xf32> to vector<3x256xbf16>
    %cst_22 = arith.constant dense<0.000000e+00> : vector<3x256xf32>
    %71 = tpu.matmul %70, %7, %cst_22 {dimension_numbers = #tpu.dot_dimension_numbers<[1], [0], [0], [1], [0, 0, 1, 1], [], []>} : vector<3x256xbf16>, vector<256x256xbf16>, vector<3x256xf32> -> vector<3x256xf32>
    %72 = arith.addf %6, %71 : vector<3x256xf32>
    %c0_23 = arith.constant 0 : index
    %c0_24 = arith.constant 0 : index
    %c0_25 = arith.constant 0 : index
    %73 = vector.load %arg5[%c0_23, %c0_24, %c0_25] : memref<1x3x256xf32, #tpu.memory_space<vmem>>, vector<1x3x256xf32>
    %74 = vector.shape_cast %73 : vector<1x3x256xf32> to vector<3x256xf32>
    %75 = vector.shape_cast %72 : vector<3x256xf32> to vector<1x3x256xf32>
    tpu.vector_store %arg5[%c0_23, %c0_24, %c0_25], %75 {strides = array<i32>} : memref<1x3x256xf32, #tpu.memory_space<vmem>>, vector<1x3x256xf32>,
    return
  }
  func.func @transform_0(%arg0: i32) -> (i32, i32, i32) {
    %c0_i32 = arith.constant 0 : i32
    %c0_i32_0 = arith.constant 0 : i32
    %c0_i32_1 = arith.constant 0 : i32
    return %arg0, %c0_i32, %c0_i32_0 : i32, i32, i32
  }
  func.func @transform_1(%arg0: i32) -> (i32, i32) {
    %c0_i32 = arith.constant 0 : i32
    %c0_i32_0 = arith.constant 0 : i32
    %c0_i32_1 = arith.constant 0 : i32
    return %c0_i32, %c0_i32_0 : i32, i32
  }
  func.func @transform_2(%arg0: i32) -> (i32, i32) {
    %c0_i32 = arith.constant 0 : i32
    %c0_i32_0 = arith.constant 0 : i32
    %c0_i32_1 = arith.constant 0 : i32
    return %c0_i32, %c0_i32_0 : i32, i32
  }
  func.func @transform_3(%arg0: i32) -> (i32, i32) {
    %c0_i32 = arith.constant 0 : i32
    %c0_i32_0 = arith.constant 0 : i32
    %c0_i32_1 = arith.constant 0 : i32
    return %c0_i32, %c0_i32_0 : i32, i32
  }
  func.func @transform_4(%arg0: i32) -> (i32, i32, i32) {
    %c0_i32 = arith.constant 0 : i32
    %c0_i32_0 = arith.constant 0 : i32
    %c0_i32_1 = arith.constant 0 : i32
    return %arg0, %c0_i32, %c0_i32_0 : i32, i32, i32
  }
}

</mosaic_0001>

<bundles_post_ra>
// kernel: tpu_custom_call.1
= control target key start
LH: loop header
LB: loop body
LE: loop exit
PB: predicated region body
PF: predicated region fallthrough
CT: control target
= control target key end

     0   :  { %9 = vsyncpa [#allocation3], 0  ;;  %s1718_s0 = inlined_call_operand.hbm [shape: bf16[2,8,256], index: 0, kind: input, shape index: {}]   ;;  %s1719_s1 = inlined_call_operand.vmem [shape: bf16[3,8], index: 1, kind: input, shape index: {}]   ;;  %s1720_s2 = inlined_call_operand.vmem [shape: f32[3,1], index: 2, kind: input, shape index: {}]   ;;  %s1721_s3 = inlined_call_operand.hbm [shape: bf16[256,256], index: 3, kind: input, shape index: {}]   ;;  %s1722_s4 = inlined_call_operand.vmem [shape: f32[2,3,256], index: 4, kind: output, shape index: {}]  }
   0x1   :  { %11 = vsyncpa [#allocation3 + $0x1], 0 }
   0x2   :  { %12 = vsyncpa [#allocation5], 0  ;;  %s1311_s15 = smov 0   ;;  %s1313_s16 = smov 0  }
   0x3   :  { %s1315_s17 = smov 0   ;;  %s1317_s18 = smov 0  }
   0x4 LB: > { %s1330_s19 = sadd.s32 4294967295, %s1279_s18   ;;  %p38_p0 = scmp.ne.s32.totalorder %s1271_s16, %s1267_s15  ;;  %s1279_s18 = sphi %s1317_s18, %s1737_s18   ;;  %s1275_s17 = sphi %s1315_s17, %s1736_s17   ;;  %s1271_s16 = sphi %s1313_s16, %s1735_s16   ;;  %s1267_s15 = sphi %s1311_s15, %s1734_s15  }
   0x5   : > { %p1723_p1 = scmp.eq.s32.totalorder %s1330_s19, 0  ;;  %p988_p2 = scmp.ge.s32.totalorder %s1279_s18, 1 }
   0x6   : > { %p138_p3 = scmp.lt.s32.totalorder %s1279_s18, 3  ;;  %s1281_s22 = smov [#allocation4]  }
   0x7   : > { %p1338_p4 = por %p1723_p1, %p38_p0  ;;  %s156_s23 = sshll.u32 %s1281_s22, 4  ;;  %s157_s23 = int_to_ptr.vmem [resolvable:$true] %s156_s23 }
   0x8   : > { %p1342_p5 = pnand %p988_p2, %p138_p3  ;;  %s1355_s25 = sadd.s32 1, %s1279_s18  }
   0x9   : > { %s1726_s20 = scalar_select %p1338_p4, 1, 0 }
   0xa   : > { %s1727_s21 = scalar_select %p1342_p5, 1, 0 }
   0xb   : > { %p1045_p6 = pneg %p1342_p5  ;;  %s25_s26 = sadd.s32 1, %s1275_s17 }
   0xc   : > { %s22_s27 = ssub.s32 %s1279_s18, %s1355_s25  ;;  %s1183_s30 = scalar_lea.hbm %s1721_s3, 4096 }
   0xd   : > { %p1350_p7 = pnand %p1045_p6, %p1723_p1  ;;  %p1184_p8 = scmp.ne.s32.totalorder %s1721_s3, %s1183_s30 }
   0xe   : > { %p1190_p12 = scmp.lt.u32.totalorder %s1183_s30, %s1721_s3 }
   0xf   : > { %p1185_p9 = pneg %p1350_p7 }
  0x11   : > { %p1186_p10 = pnand %p1185_p9, %p1184_p8 }
  0x13   : > { %p1187_p11 = pneg %p1186_p10 }
  0x15   : > { %p1192_p13 = pnand %p1190_p12, %p1187_p11 }
  0x17   : > { %1195 = shalt.err (!%p1192_p13)
}
  0x18   : > { %s1196_s9 = scalar_lea.vmem %s157_s23, 4096  ;;  %p1204_p6 = scmp.lt.s32.totalorder %s157_s23, %s157_s23 }
  0x19   : > { %p1197_p0 = scmp.ne.s32.totalorder %s157_s23, %s1196_s9  ;;  %p1205_p1 = scmp.lt.s32.totalorder %s1196_s9, %s1196_s9 }
  0x1b   : > { %p1199_p2 = pnand %p1197_p0, %p1185_p9  ;;  %p1206_p4 = por %p1205_p1, %p1204_p6 }
  0x1d   : > { %p1200_p3 = pneg %p1199_p2 }
  0x1f   : > { %p1207_p5 = pnand %p1206_p4, %p1200_p3 }
  0x21   : > { %1210 = shalt.err (!%p1207_p5)
}
  0x22   : > { %s1282_s10 = smov 128   ;;  %s1283_s11 = smov 8  }
  0x23   : > { %1048 = dma.hbm_to_vmem [thread:$0]  (!%p1350_p7), %s1721_s3, 4096, %s157_s23, [#allocation5], %s1282_s10, %s1282_s10, %s1283_s11  }
  0x24   : > { %p23_p8 = scmp.eq.s32.totalorder %s22_s27, 0  ;;  %p32_p9 = scmp.ne.s32.totalorder %s1275_s17, %s1271_s16 }
  0x25   : > { %p33_p1 = scmp.eq.s32.totalorder %s1279_s18, 0  ;;  %p1054_p4 = scmp.lt.s32.totalorder %s1279_s18, 2 }
  0x26   : > { %s1381_s14 = scalar_select %p23_p8, %s1275_s17, %s25_s26  }
  0x27   : > { %p34_p5 = por %p33_p1, %p32_p9  ;;  %s170_s15 = sand.u32 1, %s1275_s17  }
  0x28   : > { %s991_s22 = sshll.u32 %s170_s15, 3  ;;  %s1037_s28 = sshll.u32 %s1279_s18, 7 }
  0x29   : > { %s1388_s5 = scalar_lea.hbm %s1718_s0, %s1037_s28  ;;  %s174_s23 = scalar_lea.vmem [#allocation2], %s991_s22 }
  0x2a   : > { %s182_s24 = sshll.u32 %s174_s23, 4  ;;  %p1392_p7 = pnand %p1054_p4, %p34_p5  ;;  %s1390_s24 = int_to_ptr.vmem [resolvable:$true] %s182_s24 }
  0x2b   : > { %s171_s18 = scalar_lea.sflag [#allocation3], %s170_s15  ;;  %s1211_s27 = scalar_lea.hbm %s1388_s5, 128 }
  0x2c   : > { %p1212_p10 = scmp.ne.s32.totalorder %s1388_s5, %s1211_s27  ;;  %p1213_p11 = pneg %p1392_p7 }
  0x2d   : > { %s1216_s8 = scalar_lea.hbm %s1718_s0, 256  ;;  %p1217_p0 = scmp.lt.u32.totalorder %s1388_s5, %s1718_s0 }
  0x2e   : > { %p1214_p12 = pnand %p1213_p11, %p1212_p10  ;;  %p1218_p2 = scmp.lt.u32.totalorder %s1216_s8, %s1211_s27 }
  0x2f   : > { %p1220_p6 = scmp.lt.u32.totalorder %s1211_s27, %s1388_s5 }
  0x30   : > { %p1215_p13 = pneg %p1214_p12  ;;  %p1219_p3 = por %p1218_p2, %p1217_p0 }
  0x32   : > { %p1221_p8 = por %p1220_p6, %p1219_p3 }
  0x34   : > { %p1222_p9 = pnand %p1221_p8, %p1215_p13 }
  0x36   : > { %1225 = shalt.err (!%p1222_p9)
}
  0x37   : > { %s1226_s11 = scalar_lea.vmem %s1390_s24, 128  ;;  %s1284_s12 = smov [#allocation2]  }
  0x38   : > { %p1227_p1 = scmp.ne.s32.totalorder %s1390_s24, %s1226_s11  ;;  %s1231_s13 = sshll.u32 %s1284_s12, 4  ;;  %s1232_s13 = int_to_ptr.vmem [resolvable:$false] %s1231_s13 }
  0x39   : > { %s1233_s15 = scalar_lea.vmem %s1232_s13, 256  ;;  %p1234_p10 = scmp.lt.s32.totalorder %s1390_s24, %s1232_s13 }
  0x3a   : > { %p1229_p4 = pnand %p1227_p1, %p1213_p11  ;;  %p1235_p12 = scmp.lt.s32.totalorder %s1233_s15, %s1226_s11 }
  0x3c   : > { %p1230_p5 = pneg %p1229_p4  ;;  %p1236_p0 = por %p1235_p12, %p1234_p10 }
  0x3e   : > { %p1237_p2 = pnand %p1236_p0, %p1230_p5 }
  0x40   : > { %1240 = shalt.err (!%p1237_p2)
}
  0x41   : > { %1052 = dma.hbm_to_vmem [thread:$0]  (!%p1392_p7), %s1388_s5, 128, %s1390_s24, %s171_s18  }
  0x42   : > { %p1730_p13 = scmp.ne.s32.totalorder %s1727_s21, 0 }
  0x43   : > { %s193_s22 = sand.u32 (!%p1730_p13), 1, %s1271_s16   ;;  %p1731_p11 = scmp.ne.s32.totalorder (!%p1730_p13), %s1726_s20, 0 }
  0x44   : > { %191 = sbr.rel (%p1730_p13) target bundleno = 1664 (0x680), region = 36  ;;  %s995_s28 = sshll.u32 (!%p1730_p13), %s193_s22, 3 }
  0x45   : > { %s194_s29 = scalar_lea.sflag (!%p1730_p13), [#allocation3], %s193_s22  ;;  %s197_s30 = scalar_lea.vmem (!%p1730_p13), [#allocation2], %s995_s28 }
  0x4b   : > { %1258 = dma.done.wait (%p1731_p11), %s194_s29, 128  }
  0x4c   : > { %1260 = vsyncadd (%p1731_p11), %s194_s29, 4294967168  ;;  %p1732_p3 = scmp.eq.s32.totalorder %s1330_s19, 0 }
  0x4e   : > { %1262 = dma.done.wait (%p1732_p3), [#allocation5], 4096   ;;  %p1733_p6 = pmov %p1732_p3 }
  0x4f   : > { %v1285_v0 = vmov 0   ;;  %v233_v1 = vld [vmem:[%s197_s30] sm:$0xff]  ;;  %vm249_vm0 = vcmask 1043456   ;;  %v1435_v5 = vld [vmem:[#allocation4 + $0x4] ss:$8 sps:$4 sm:$0xff]   ;;  %vm245_vm1 = vcmask 64512  }
  0x50   : > { %1264 = vsyncadd (%p1733_p6), [#allocation5], 4294963200  ;;  %288 = vmatprep.mubr.bf16.mxu0 %v1285_v0  ;;  %1092 = vset.pattern.permute.xlu0 %v1285_v0  ;;  %v234_v2 = vld [vmem:[%s1720_s2] sm:$0x7]  ;;  %v1000_v3 = vcombine.high %v233_v1, %v233_v1  ;;  %v999_v4 = vcombine.low %v233_v1, %v233_v1  ;;  %v1440_v7 = vld [vmem:[#allocation4] ss:$8 sps:$4 sm:$0xff]  }
  0x51   : > { %237 = vperm.xlu0 %1092, %v234_v2   ;;  %v232_v6 = vld [vmem:[%s1719_s1] sm:$0x3]  ;;  %530 = vmatprep.subr.bf16.mxu1 %v1435_v5  ;;  %v1446_v9 = vld [vmem:[#allocation4 + $0x14] ss:$8 sps:$4 sm:$0xff]   ;;  %v1454_v11 = vld [vmem:[#allocation4 + $0x24] ss:$8 sps:$4 sm:$0xff]  }
  0x52   : > { %1001 = vmatprep.subr.msk.bf16.mxu0 %vm249_vm0, %v1000_v3  ;;  %v251_v8 = vsel %vm249_vm0, %v999_v4, 0  ;;  %531 = vmatpush1.bf16.msra.mxu1 %v1440_v7  ;;  %v1448_v10 = vld [vmem:[#allocation4 + $0x10] ss:$8 sps:$4 sm:$0xff]   ;;  %v1456_v12 = vld [vmem:[#allocation4 + $0x20] ss:$8 sps:$4 sm:$0xff]   ;;  %vm329_vm2 = vcmask 1042432  }
  0x53   : > { %257 = vmatpush1.bf16.msra.mxu0 %v251_v8  ;;  %532 = vmatprep.subr.bf16.mxu1 %v1446_v9  ;;  %v1458_v13 = vld [vmem:[#allocation4 + $0x34] ss:$8 sps:$4 sm:$0xff]   ;;  %v1463_v14 = vld [vmem:[#allocation4 + $0x30] ss:$8 sps:$4 sm:$0xff]   ;;  %v1467_v15 = vld [vmem:[#allocation4 + $0x44] ss:$8 sps:$4 sm:$0xff]  }
  0x54   : > { %613 = vmatprep.subr.bf16.mxu0 %v1435_v5  ;;  %v1471_v16 = vld [vmem:[#allocation4 + $0x40] ss:$8 sps:$4 sm:$0xff]   ;;  %v1475_v17 = vld [vmem:[#allocation4 + $0x54] ss:$8 sps:$4 sm:$0xff]   ;;  %v1479_v18 = vld [vmem:[#allocation4 + $0x50] ss:$8 sps:$4 sm:$0xff]  }
  0x55   : > { %v1483_v19 = vld [vmem:[#allocation4 + $0x64] ss:$8 sps:$4 sm:$0xff]   ;;  %v1487_v20 = vld [vmem:[#allocation4 + $0x60] ss:$8 sps:$4 sm:$0xff]   ;;  %v1491_v21 = vld [vmem:[#allocation4 + $0x74] ss:$8 sps:$4 sm:$0xff]  }
  0x56   : > { %1002 = vmatmul.mubr.msk.bf16.vlgmr.msra.gmra.mrb[0].mxu0 %vm245_vm1, %v232_v6  ;;  %533 = vmatpush1.bf16.msra.mxu1 %v1448_v10  ;;  %v1495_v22 = vld [vmem:[#allocation4 + $0x70] ss:$8 sps:$4 sm:$0xff]   ;;  %v1499_v23 = vld [vmem:[#allocation4 + $0x84] ss:$8 sps:$4 sm:$0xff]   ;;  %v1503_v24 = vld [vmem:[#allocation4 + $0x80] ss:$8 sps:$4 sm:$0xff]  }
  0x57   : > { %614 = vmatpush1.bf16.msra.mxu0 %v1440_v7  ;;  %534 = vmatprep.subr.bf16.mxu1 %v1454_v11  ;;  %v1507_v25 = vld [vmem:[#allocation4 + $0x94] ss:$8 sps:$4 sm:$0xff]   ;;  %v1511_v26 = vld [vmem:[#allocation4 + $0x90] ss:$8 sps:$4 sm:$0xff]   ;;  %v1515_v27 = vld [vmem:[#allocation4 + $0xa4] ss:$8 sps:$4 sm:$0xff]  }
  0x58   : > { %615 = vmatprep.subr.bf16.mxu0 %v1446_v9  ;;  %v1519_v28 = vld [vmem:[#allocation4 + $0xa0] ss:$8 sps:$4 sm:$0xff]   ;;  %v1523_v29 = vld [vmem:[#allocation4 + $0xb4] ss:$8 sps:$4 sm:$0xff]   ;;  %v1527_v30 = vld [vmem:[#allocation4 + $0xb0] ss:$8 sps:$4 sm:$0xff]  }
  0x59   : > { %v1531_v31 = vld [vmem:[#allocation4 + $0xc4] ss:$8 sps:$4 sm:$0xff]   ;;  %v1535_v32 = vld [vmem:[#allocation4 + $0xc0] ss:$8 sps:$4 sm:$0xff]   ;;  %v1539_v33 = vld [vmem:[#allocation4 + $0xd4] ss:$8 sps:$4 sm:$0xff]  }
  0x5a   : > { %535 = vmatpush1.bf16.msra.mxu1 %v1456_v12  ;;  %v1543_v34 = vld [vmem:[#allocation4 + $0xd0] ss:$8 sps:$4 sm:$0xff]   ;;  %v1547_v35 = vld [vmem:[#allocation4 + $0xe4] ss:$8 sps:$4 sm:$0xff]   ;;  %v1551_v36 = vld [vmem:[#allocation4 + $0xe0] ss:$8 sps:$4 sm:$0xff]  }
  0x5b   : > { %616 = vmatpush1.bf16.msra.mxu0 %v1448_v10  ;;  %536 = vmatprep.subr.bf16.mxu1 %v1458_v13  ;;  %v1555_v37 = vld [vmem:[#allocation4 + $0xf4] ss:$8 sps:$4 sm:$0xff]   ;;  %v1559_v38 = vld [vmem:[#allocation4 + $0xf0] ss:$8 sps:$4 sm:$0xff]   ;;  %p226_p7 = scmp.lt.s32.totalorder %s1330_s19, 1 }
  0x5c   : > { %617 = vmatprep.subr.bf16.mxu0 %v1454_v11 }
  0x5d   : > { %s1739_s19 = smov (!%p226_p7, %s1330_s19), 1 }
  0x5e   : > { %537 = vmatpush1.bf16.msra.mxu1 %v1463_v14  ;;  %s1038_s24 = sshll.u32 %s1739_s19, 3 }
  0x5f   : > { %618 = vmatpush1.bf16.msra.mxu0 %v1456_v12  ;;  %538 = vmatprep.subr.bf16.mxu1 %v1467_v15  ;;  %s230_s27 = scalar_lea.vmem %s1722_s4, %s1038_s24 }
  0x60   : > { %619 = vmatprep.subr.bf16.mxu0 %v1458_v13 }
  0x62   : > { %539 = vmatpush1.bf16.msra.mxu1 %v1471_v16 }
  0x63   : > { %620 = vmatpush1.bf16.msra.mxu0 %v1463_v14  ;;  %540 = vmatprep.subr.bf16.mxu1 %v1475_v17 }
  0x64   : > { %621 = vmatprep.subr.bf16.mxu0 %v1467_v15 }
  0x66   : > { %541 = vmatpush1.bf16.msra.mxu1 %v1479_v18 }
  0x67   : > { %622 = vmatpush1.bf16.msra.mxu0 %v1471_v16  ;;  %542 = vmatprep.subr.bf16.mxu1 %v1483_v19 }
  0x68   : > { %623 = vmatprep.subr.bf16.mxu0 %v1475_v17 }
  0x6a   : > { %543 = vmatpush1.bf16.msra.mxu1 %v1487_v20 }
  0x6b   : > { %624 = vmatpush1.bf16.msra.mxu0 %v1479_v18  ;;  %544 = vmatprep.subr.bf16.mxu1 %v1491_v21 }
  0x6c   : > { %625 = vmatprep.subr.bf16.mxu0 %v1483_v19 }
  0x6e   : > { %545 = vmatpush1.bf16.msra.mxu1 %v1495_v22 }
  0x6f   : > { %626 = vmatpush1.bf16.msra.mxu0 %v1487_v20  ;;  %546 = vmatprep.subr.bf16.mxu1 %v1499_v23 }
  0x70   : > { %627 = vmatprep.subr.bf16.mxu0 %v1491_v21 }
  0x72   : > { %547 = vmatpush1.bf16.msra.mxu1 %v1503_v24 }
  0x73   : > { %628 = vmatpush1.bf16.msra.mxu0 %v1495_v22  ;;  %548 = vmatprep.subr.bf16.mxu1 %v1507_v25 }
  0x74   : > { %629 = vmatprep.subr.bf16.mxu0 %v1499_v23 }
  0x76   : > { %549 = vmatpush1.bf16.msra.mxu1 %v1511_v26 }
  0x77   : > { %630 = vmatpush1.bf16.msra.mxu0 %v1503_v24  ;;  %550 = vmatprep.subr.bf16.mxu1 %v1515_v27 }
  0x78   : > { %631 = vmatprep.subr.bf16.mxu0 %v1507_v25 }
  0x7a   : > { %551 = vmatpush1.bf16.msra.mxu1 %v1519_v28 }
  0x7b   : > { %632 = vmatpush1.bf16.msra.mxu0 %v1511_v26  ;;  %552 = vmatprep.subr.bf16.mxu1 %v1523_v29 }
  0x7c   : > { %633 = vmatprep.subr.bf16.mxu0 %v1515_v27 }
  0x7e   : > { %553 = vmatpush1.bf16.msra.mxu1 %v1527_v30 }
  0x7f   : > { %634 = vmatpush1.bf16.msra.mxu0 %v1519_v28  ;;  %554 = vmatprep.subr.bf16.mxu1 %v1531_v31 }
  0x80   : > { %635 = vmatprep.subr.bf16.mxu0 %v1523_v29 }
  0x82   : > { %555 = vmatpush1.bf16.msra.mxu1 %v1535_v32 }
  0x83   : > { %636 = vmatpush1.bf16.msra.mxu0 %v1527_v30  ;;  %556 = vmatprep.subr.bf16.mxu1 %v1539_v33 }
  0x84   : > { %637 = vmatprep.subr.bf16.mxu0 %v1531_v31 }
  0x86   : > { %557 = vmatpush1.bf16.msra.mxu1 %v1543_v34 }
  0x87   : > { %638 = vmatpush1.bf16.msra.mxu0 %v1535_v32  ;;  %558 = vmatprep.subr.bf16.mxu1 %v1547_v35 }
  0x88   : > { %639 = vmatprep.subr.bf16.mxu0 %v1539_v33 }
  0x8a   : > { %559 = vmatpush1.bf16.msra.mxu1 %v1551_v36 }
  0x8b   : > { %640 = vmatpush1.bf16.msra.mxu0 %v1543_v34  ;;  %560 = vmatprep.subr.bf16.mxu1 %v1555_v37 }
  0x8c   : > { %641 = vmatprep.subr.bf16.mxu0 %v1547_v35 }
  0x8e   : > { %561 = vmatpush1.bf16.msra.mxu1 %v1559_v38 }
  0x8f   : > { %642 = vmatpush1.bf16.msra.mxu0 %v1551_v36  ;;  %696 = vmatprep.subr.bf16.mxu1 %v1435_v5 }
  0x90   : > { %643 = vmatprep.subr.bf16.mxu0 %v1555_v37 }
  0x93   : > { %644 = vmatpush1.bf16.msra.mxu0 %v1559_v38 }
  0x94   : > { %779 = vmatprep.subr.bf16.mxu0 %v1435_v5 }
  0xd0   : > { %v238_v39 = vpop.permute.xlu0 %237 }
 0x129   : > { %v290_v40 = vpop.f32.mrb[0].mxu0 }
 0x12a   : > { %v1568_v41 = vadd.f32 %v290_v40, %v238_v39  ;;  %v292_v42 = vpop.f32.mrb[1].mxu0 }
 0x12b   : > { %v1570_v43 = vadd.f32 %v292_v42, %v238_v39  ;;  %v294_v44 = vpop.f32.mrb[2].mxu0 }
 0x12c   : > { %v295_v45 = vpop.f32.mrb[3].mxu0  ;;  %v330_v46 = vsel %vm329_vm2, %v1568_v41, -inf }
 0x12d   : > { %v337_v47 = vsel %vm329_vm2, %v1570_v43, -inf  ;;  %v331_v48 = vrot.slane %v330_v46, 4 }
 0x12e   : > { %v338_v49 = vrot.slane %v337_v47, 4 }
 0x12f   : > { %v332_v50 = vmax.f32 %v330_v46, %v331_v48 }
 0x130   : > { %v339_v51 = vmax.f32 %v337_v47, %v338_v49 }
 0x131   : > { %v333_v52 = vrot.slane %v332_v50, 2 }
 0x132   : > { %v340_v53 = vrot.slane %v339_v51, 2 }
 0x133   : > { %v334_v54 = vmax.f32 %v332_v50, %v333_v52 }
 0x134   : > { %v341_v55 = vmax.f32 %v339_v51, %v340_v53 }
 0x135   : > { %v335_v56 = vrot.slane %v334_v54, 1 }
 0x136   : > { %v342_v57 = vrot.slane %v341_v55, 1 }
 0x137   : > { %v336_v58 = vmax.f32 %v334_v54, %v335_v56 }
 0x138   : > { %v343_v59 = vmax.f32 %v341_v55, %v342_v57 }
 0x139   : > { %v344_v60 = vsub.f32 %v1568_v41, %v336_v58 }
 0x13a   : > { %v345_v61 = vsub.f32 %v1570_v43, %v343_v59 }
 0x13b   : > { %v346_v62 = vmul.f32 1.442695, %v344_v60 }
 0x13c   : > { %v348_v63 = vmul.f32 1.442695, %v345_v61 }
 0x13d   : > { %1143 = vpow2.f32 %v346_v62 }
 0x13e   : > { %1145 = vpow2.f32 %v348_v63 }
 0x147   : > { %v1144_v0 = vpop.eup %1143 }
 0x148   : > { %v1146_v1 = vpop.eup %1145  ;;  %v350_v2 = vsel %vm329_vm2, %v1144_v0, 0.0 }
 0x149   : > { %v357_v3 = vsel %vm329_vm2, %v1146_v1, 0.0  ;;  %v351_v4 = vrot.slane %v350_v2, 4 }
 0x14a   : > { %v358_v6 = vrot.slane %v357_v3, 4 }
 0x14b   : > { %v352_v8 = vadd.f32 %v351_v4, %v350_v2 }
 0x14c   : > { %v359_v39 = vadd.f32 %v358_v6, %v357_v3 }
 0x14d   : > { %v353_v40 = vrot.slane %v352_v8, 2 }
 0x14e   : > { %v360_v42 = vrot.slane %v359_v39, 2 }
 0x14f   : > { %v354_v44 = vadd.f32 %v353_v40, %v352_v8 }
 0x150   : > { %v361_v45 = vadd.f32 %v360_v42, %v359_v39 }
 0x151   : > { %v355_v46 = vrot.slane %v354_v44, 1 }
 0x152   : > { %v362_v47 = vrot.slane %v361_v45, 1 }
 0x153   : > { %v356_v48 = vadd.f32 %v355_v46, %v354_v44 }
 0x154   : > { %v363_v49 = vadd.f32 %v362_v47, %v361_v45 }
 0x155   : > { %1147 = vrcp.f32 %v356_v48 }
 0x156   : > { %1149 = vrcp.f32 %v363_v49 }
 0x15f   : > { %v1148_v50 = vpop.eup %1147 }
 0x160   : > { %v1150_v51 = vpop.eup %1149  ;;  %v366_v52 = vmul.f32 %v1148_v50, %v1144_v0 }
 0x161   : > { %v367_v53 = vmul.f32 %v1150_v51, %v1146_v1 }
 0x162   : > { %v368_v55 = vpack.c.bf16 %v366_v52, %v366_v52 }
 0x163   : > { %v369_v54 = vpack.c.bf16 %v367_v53, %v367_v53 }
 0x165   : > { %562 = vmatprep.mubr.bf16.mxu1 %v369_v54 }
 0x166   : > { %563 = vmatmul.mubr.bf16.vlgmr.msra.gmra.mrb[0].mxu1 %v368_v55 }
 0x167   : > { %697 = vmatpush1.bf16.msra.mxu1 %v1440_v7 }
 0x168   : > { %698 = vmatprep.subr.bf16.mxu1 %v1446_v9 }
 0x16b   : > { %699 = vmatpush1.bf16.msra.mxu1 %v1448_v10 }
 0x16c   : > { %700 = vmatprep.subr.bf16.mxu1 %v1454_v11 }
 0x16f   : > { %701 = vmatpush1.bf16.msra.mxu1 %v1456_v12 }
 0x170   : > { %702 = vmatprep.subr.bf16.mxu1 %v1458_v13 }
 0x173   : > { %703 = vmatpush1.bf16.msra.mxu1 %v1463_v14 }
 0x174   : > { %704 = vmatprep.subr.bf16.mxu1 %v1467_v15 }
 0x177   : > { %705 = vmatpush1.bf16.msra.mxu1 %v1471_v16 }
 0x178   : > { %706 = vmatprep.subr.bf16.mxu1 %v1475_v17 }
 0x17b   : > { %707 = vmatpush1.bf16.msra.mxu1 %v1479_v18 }
 0x17c   : > { %708 = vmatprep.subr.bf16.mxu1 %v1483_v19 }
 0x17f   : > { %709 = vmatpush1.bf16.msra.mxu1 %v1487_v20 }
 0x180   : > { %710 = vmatprep.subr.bf16.mxu1 %v1491_v21 }
 0x183   : > { %711 = vmatpush1.bf16.msra.mxu1 %v1495_v22 }
 0x184   : > { %712 = vmatprep.subr.bf16.mxu1 %v1499_v23 }
 0x187   : > { %713 = vmatpush1.bf16.msra.mxu1 %v1503_v24 }
 0x188   : > { %714 = vmatprep.subr.bf16.mxu1 %v1507_v25 }
 0x18b   : > { %715 = vmatpush1.bf16.msra.mxu1 %v1511_v26 }
 0x18c   : > { %716 = vmatprep.subr.bf16.mxu1 %v1515_v27 }
 0x18f   : > { %717 = vmatpush1.bf16.msra.mxu1 %v1519_v28 }
 0x190   : > { %718 = vmatprep.subr.bf16.mxu1 %v1523_v29 }
 0x193   : > { %719 = vmatpush1.bf16.msra.mxu1 %v1527_v30 }
 0x194   : > { %720 = vmatprep.subr.bf16.mxu1 %v1531_v31 }
 0x197   : > { %721 = vmatpush1.bf16.msra.mxu1 %v1535_v32 }
 0x198   : > { %722 = vmatprep.subr.bf16.mxu1 %v1539_v33 }
 0x19b   : > { %723 = vmatpush1.bf16.msra.mxu1 %v1543_v34 }
 0x19c   : > { %724 = vmatprep.subr.bf16.mxu1 %v1547_v35 }
 0x19f   : > { %725 = vmatpush1.bf16.msra.mxu1 %v1551_v36 }
 0x1a0   : > { %726 = vmatprep.subr.bf16.mxu1 %v1555_v37 }
 0x1a3   : > { %727 = vmatpush1.bf16.msra.mxu1 %v1559_v38 }
 0x1a4   : > { %862 = vmatprep.subr.bf16.mxu1 %v1435_v5 }
 0x239   : > { %v564_v56 = vpop.f32.mrb[0].mxu1 }
 0x23a   : > { %v571_v57 = vadd.f32 %v564_v56, %v1568_v41  ;;  %v566_v58 = vpop.f32.mrb[1].mxu1 }
 0x23b   : > { %v572_v59 = vadd.f32 %v566_v58, %v1570_v43  ;;  %v568_v60 = vpop.f32.mrb[2].mxu1 }
 0x23c   : > { %v573_v61 = vsel %vm329_vm2, %v571_v57, -inf  ;;  %v569_v62 = vpop.f32.mrb[3].mxu1 }
 0x23d   : > { %v574_v63 = vrot.slane %v573_v61, 4  ;;  %v580_v0 = vsel %vm329_vm2, %v572_v59, -inf }
 0x23e   : > { %v581_v1 = vrot.slane %v580_v0, 4 }
 0x23f   : > { %v575_v2 = vmax.f32 %v573_v61, %v574_v63 }
 0x240   : > { %v582_v3 = vmax.f32 %v580_v0, %v581_v1 }
 0x241   : > { %v576_v4 = vrot.slane %v575_v2, 2 }
 0x242   : > { %v583_v6 = vrot.slane %v582_v3, 2 }
 0x243   : > { %v577_v8 = vmax.f32 %v575_v2, %v576_v4 }
 0x244   : > { %v584_v5 = vmax.f32 %v582_v3, %v583_v6 }
 0x245   : > { %v578_v39 = vrot.slane %v577_v8, 1 }
 0x246   : > { %v585_v40 = vrot.slane %v584_v5, 1 }
 0x247   : > { %v579_v42 = vmax.f32 %v577_v8, %v578_v39 }
 0x248   : > { %v586_v44 = vmax.f32 %v584_v5, %v585_v40 }
 0x249   : > { %v587_v45 = vsub.f32 %v571_v57, %v579_v42 }
 0x24a   : > { %v588_v46 = vsub.f32 %v572_v59, %v586_v44 }
 0x24b   : > { %v589_v47 = vmul.f32 1.442695, %v587_v45 }
 0x24c   : > { %v591_v48 = vmul.f32 1.442695, %v588_v46 }
 0x24d   : > { %1151 = vpow2.f32 %v589_v47 }
 0x24e   : > { %1153 = vpow2.f32 %v591_v48 }
 0x257   : > { %v1152_v49 = vpop.eup %1151 }
 0x258   : > { %v1154_v50 = vpop.eup %1153  ;;  %v593_v51 = vsel %vm329_vm2, %v1152_v49, 0.0 }
 0x259   : > { %v594_v52 = vrot.slane %v593_v51, 4  ;;  %v600_v53 = vsel %vm329_vm2, %v1154_v50, 0.0 }
 0x25a   : > { %v601_v54 = vrot.slane %v600_v53, 4 }
 0x25b   : > { %v595_v55 = vadd.f32 %v594_v52, %v593_v51 }
 0x25c   : > { %v602_v56 = vadd.f32 %v601_v54, %v600_v53 }
 0x25d   : > { %v596_v58 = vrot.slane %v595_v55, 2 }
 0x25e   : > { %v603_v60 = vrot.slane %v602_v56, 2 }
 0x25f   : > { %v597_v61 = vadd.f32 %v596_v58, %v595_v55 }
 0x260   : > { %v604_v62 = vadd.f32 %v603_v60, %v602_v56 }
 0x261   : > { %v598_v57 = vrot.slane %v597_v61, 1 }
 0x262   : > { %v605_v59 = vrot.slane %v604_v62, 1 }
 0x263   : > { %v599_v63 = vadd.f32 %v598_v57, %v597_v61 }
 0x264   : > { %v606_v0 = vadd.f32 %v605_v59, %v604_v62 }
 0x265   : > { %1155 = vrcp.f32 %v599_v63 }
 0x266   : > { %1157 = vrcp.f32 %v606_v0 }
 0x26f   : > { %v1156_v1 = vpop.eup %1155 }
 0x270   : > { %v1158_v2 = vpop.eup %1157  ;;  %v609_v3 = vmul.f32 %v1156_v1, %v1152_v49 }
 0x271   : > { %v610_v4 = vmul.f32 %v1158_v2, %v1154_v50 }
 0x272   : > { %v611_v8 = vpack.c.bf16 %v609_v3, %v609_v3 }
 0x273   : > { %v612_v6 = vpack.c.bf16 %v610_v4, %v610_v4 }
 0x275   : > { %645 = vmatprep.mubr.bf16.mxu0 %v612_v6 }
 0x276   : > { %646 = vmatmul.mubr.bf16.vlgmr.msra.gmra.mrb[4].mxu0 %v611_v8 }
 0x277   : > { %780 = vmatpush1.bf16.msra.mxu0 %v1440_v7 }
 0x278   : > { %781 = vmatprep.subr.bf16.mxu0 %v1446_v9 }
 0x27b   : > { %782 = vmatpush1.bf16.msra.mxu0 %v1448_v10 }
 0x27c   : > { %783 = vmatprep.subr.bf16.mxu0 %v1454_v11 }
 0x27f   : > { %784 = vmatpush1.bf16.msra.mxu0 %v1456_v12 }
 0x280   : > { %785 = vmatprep.subr.bf16.mxu0 %v1458_v13 }
 0x283   : > { %786 = vmatpush1.bf16.msra.mxu0 %v1463_v14 }
 0x284   : > { %787 = vmatprep.subr.bf16.mxu0 %v1467_v15 }
 0x287   : > { %788 = vmatpush1.bf16.msra.mxu0 %v1471_v16 }
 0x288   : > { %789 = vmatprep.subr.bf16.mxu0 %v1475_v17 }
 0x28b   : > { %790 = vmatpush1.bf16.msra.mxu0 %v1479_v18 }
 0x28c   : > { %791 = vmatprep.subr.bf16.mxu0 %v1483_v19 }
 0x28f   : > { %792 = vmatpush1.bf16.msra.mxu0 %v1487_v20 }
 0x290   : > { %793 = vmatprep.subr.bf16.mxu0 %v1491_v21 }
 0x293   : > { %794 = vmatpush1.bf16.msra.mxu0 %v1495_v22 }
 0x294   : > { %795 = vmatprep.subr.bf16.mxu0 %v1499_v23 }
 0x297   : > { %796 = vmatpush1.bf16.msra.mxu0 %v1503_v24 }
 0x298   : > { %797 = vmatprep.subr.bf16.mxu0 %v1507_v25 }
 0x29b   : > { %798 = vmatpush1.bf16.msra.mxu0 %v1511_v26 }
 0x29c   : > { %799 = vmatprep.subr.bf16.mxu0 %v1515_v27 }
 0x29f   : > { %800 = vmatpush1.bf16.msra.mxu0 %v1519_v28 }
 0x2a0   : > { %801 = vmatprep.subr.bf16.mxu0 %v1523_v29 }
 0x2a3   : > { %802 = vmatpush1.bf16.msra.mxu0 %v1527_v30 }
 0x2a4   : > { %803 = vmatprep.subr.bf16.mxu0 %v1531_v31 }
 0x2a7   : > { %804 = vmatpush1.bf16.msra.mxu0 %v1535_v32 }
 0x2a8   : > { %805 = vmatprep.subr.bf16.mxu0 %v1539_v33 }
 0x2ab   : > { %806 = vmatpush1.bf16.msra.mxu0 %v1543_v34 }
 0x2ac   : > { %807 = vmatprep.subr.bf16.mxu0 %v1547_v35 }
 0x2af   : > { %808 = vmatpush1.bf16.msra.mxu0 %v1551_v36 }
 0x2b0   : > { %809 = vmatprep.subr.bf16.mxu0 %v1555_v37 }
 0x2b3   : > { %810 = vmatpush1.bf16.msra.mxu0 %v1559_v38 }
 0x349   : > { %v647_v5 = vpop.f32.mrb[4].mxu0 }
 0x34a   : > { %v654_v39 = vadd.f32 %v647_v5, %v1568_v41  ;;  %v649_v40 = vpop.f32.mrb[5].mxu0 }
 0x34b   : > { %v655_v42 = vadd.f32 %v649_v40, %v1570_v43  ;;  %v651_v44 = vpop.f32.mrb[6].mxu0 }
 0x34c   : > { %v656_v45 = vsel %vm329_vm2, %v654_v39, -inf  ;;  %v652_v46 = vpop.f32.mrb[7].mxu0 }
 0x34d   : > { %v657_v47 = vrot.slane %v656_v45, 4  ;;  %v663_v48 = vsel %vm329_vm2, %v655_v42, -inf }
 0x34e   : > { %v664_v49 = vrot.slane %v663_v48, 4 }
 0x34f   : > { %v658_v50 = vmax.f32 %v656_v45, %v657_v47 }
 0x350   : > { %v665_v51 = vmax.f32 %v663_v48, %v664_v49 }
 0x351   : > { %v659_v52 = vrot.slane %v658_v50, 2 }
 0x352   : > { %v666_v53 = vrot.slane %v665_v51, 2 }
 0x353   : > { %v660_v54 = vmax.f32 %v658_v50, %v659_v52 }
 0x354   : > { %v667_v55 = vmax.f32 %v665_v51, %v666_v53 }
 0x355   : > { %v661_v56 = vrot.slane %v660_v54, 1 }
 0x356   : > { %v668_v58 = vrot.slane %v667_v55, 1 }
 0x357   : > { %v662_v60 = vmax.f32 %v660_v54, %v661_v56 }
 0x358   : > { %v669_v61 = vmax.f32 %v667_v55, %v668_v58 }
 0x359   : > { %v670_v62 = vsub.f32 %v654_v39, %v662_v60 }
 0x35a   : > { %v671_v57 = vsub.f32 %v655_v42, %v669_v61 }
 0x35b   : > { %v672_v59 = vmul.f32 1.442695, %v670_v62 }
 0x35c   : > { %v674_v63 = vmul.f32 1.442695, %v671_v57 }
 0x35d   : > { %1159 = vpow2.f32 %v672_v59 }
 0x35e   : > { %1161 = vpow2.f32 %v674_v63 }
 0x367   : > { %v1160_v0 = vpop.eup %1159 }
 0x368   : > { %v1162_v1 = vpop.eup %1161  ;;  %v676_v2 = vsel %vm329_vm2, %v1160_v0, 0.0 }
 0x369   : > { %v677_v3 = vrot.slane %v676_v2, 4  ;;  %v683_v4 = vsel %vm329_vm2, %v1162_v1, 0.0 }
 0x36a   : > { %v684_v6 = vrot.slane %v683_v4, 4 }
 0x36b   : > { %v678_v8 = vadd.f32 %v677_v3, %v676_v2 }
 0x36c   : > { %v685_v5 = vadd.f32 %v684_v6, %v683_v4 }
 0x36d   : > { %v679_v40 = vrot.slane %v678_v8, 2 }
 0x36e   : > { %v686_v44 = vrot.slane %v685_v5, 2 }
 0x36f   : > { %v680_v45 = vadd.f32 %v679_v40, %v678_v8 }
 0x370   : > { %v687_v46 = vadd.f32 %v686_v44, %v685_v5 }
 0x371   : > { %v681_v39 = vrot.slane %v680_v45, 1 }
 0x372   : > { %v688_v42 = vrot.slane %v687_v46, 1 }
 0x373   : > { %v682_v47 = vadd.f32 %v681_v39, %v680_v45 }
 0x374   : > { %v689_v48 = vadd.f32 %v688_v42, %v687_v46 }
 0x375   : > { %1163 = vrcp.f32 %v682_v47 }
 0x376   : > { %1165 = vrcp.f32 %v689_v48 }
 0x37f   : > { %v1164_v49 = vpop.eup %1163 }
 0x380   : > { %v1166_v50 = vpop.eup %1165  ;;  %v692_v51 = vmul.f32 %v1164_v49, %v1160_v0 }
 0x381   : > { %v693_v52 = vmul.f32 %v1166_v50, %v1162_v1 }
 0x382   : > { %v694_v54 = vpack.c.bf16 %v692_v51, %v692_v51 }
 0x383   : > { %v695_v53 = vpack.c.bf16 %v693_v52, %v693_v52 }
 0x385   : > { %728 = vmatprep.mubr.bf16.mxu1 %v695_v53 }
 0x386   : > { %729 = vmatmul.mubr.bf16.vlgmr.msra.gmra.mrb[4].mxu1 %v694_v54 }
 0x387   : > { %863 = vmatpush1.bf16.msra.mxu1 %v1440_v7 }
 0x388   : > { %864 = vmatprep.subr.bf16.mxu1 %v1446_v9 }
 0x38b   : > { %865 = vmatpush1.bf16.msra.mxu1 %v1448_v10 }
 0x38c   : > { %866 = vmatprep.subr.bf16.mxu1 %v1454_v11 }
 0x38f   : > { %867 = vmatpush1.bf16.msra.mxu1 %v1456_v12 }
 0x390   : > { %868 = vmatprep.subr.bf16.mxu1 %v1458_v13 }
 0x393   : > { %869 = vmatpush1.bf16.msra.mxu1 %v1463_v14 }
 0x394   : > { %870 = vmatprep.subr.bf16.mxu1 %v1467_v15 }
 0x397   : > { %871 = vmatpush1.bf16.msra.mxu1 %v1471_v16 }
 0x398   : > { %872 = vmatprep.subr.bf16.mxu1 %v1475_v17 }
 0x39b   : > { %873 = vmatpush1.bf16.msra.mxu1 %v1479_v18 }
 0x39c   : > { %874 = vmatprep.subr.bf16.mxu1 %v1483_v19 }
 0x39f   : > { %875 = vmatpush1.bf16.msra.mxu1 %v1487_v20 }
 0x3a0   : > { %876 = vmatprep.subr.bf16.mxu1 %v1491_v21 }
 0x3a3   : > { %877 = vmatpush1.bf16.msra.mxu1 %v1495_v22 }
 0x3a4   : > { %878 = vmatprep.subr.bf16.mxu1 %v1499_v23 }
 0x3a7   : > { %879 = vmatpush1.bf16.msra.mxu1 %v1503_v24 }
 0x3a8   : > { %880 = vmatprep.subr.bf16.mxu1 %v1507_v25 }
 0x3ab   : > { %881 = vmatpush1.bf16.msra.mxu1 %v1511_v26 }
 0x3ac   : > { %882 = vmatprep.subr.bf16.mxu1 %v1515_v27 }
 0x3af   : > { %883 = vmatpush1.bf16.msra.mxu1 %v1519_v28 }
 0x3b0   : > { %884 = vmatprep.subr.bf16.mxu1 %v1523_v29 }
 0x3b3   : > { %885 = vmatpush1.bf16.msra.mxu1 %v1527_v30 }
 0x3b4   : > { %886 = vmatprep.subr.bf16.mxu1 %v1531_v31 }
 0x3b7   : > { %887 = vmatpush1.bf16.msra.mxu1 %v1535_v32 }
 0x3b8   : > { %888 = vmatprep.subr.bf16.mxu1 %v1539_v33 }
 0x3bb   : > { %889 = vmatpush1.bf16.msra.mxu1 %v1543_v34 }
 0x3bc   : > { %890 = vmatprep.subr.bf16.mxu1 %v1547_v35 }
 0x3bf   : > { %891 = vmatpush1.bf16.msra.mxu1 %v1551_v36 }
 0x3c0   : > { %892 = vmatprep.subr.bf16.mxu1 %v1555_v37 }
 0x3c3   : > { %893 = vmatpush1.bf16.msra.mxu1 %v1559_v38 }
 0x459   : > { %v730_v7 = vpop.f32.mrb[4].mxu1 }
 0x45a   : > { %v737_v9 = vadd.f32 %v730_v7, %v1568_v41  ;;  %v732_v10 = vpop.f32.mrb[5].mxu1 }
 0x45b   : > { %v738_v11 = vadd.f32 %v732_v10, %v1570_v43  ;;  %v734_v12 = vpop.f32.mrb[6].mxu1 }
 0x45c   : > { %v739_v13 = vsel %vm329_vm2, %v737_v9, -inf  ;;  %v735_v14 = vpop.f32.mrb[7].mxu1 }
 0x45d   : > { %v740_v15 = vrot.slane %v739_v13, 4  ;;  %v746_v16 = vsel %vm329_vm2, %v738_v11, -inf }
 0x45e   : > { %v747_v17 = vrot.slane %v746_v16, 4 }
 0x45f   : > { %v741_v18 = vmax.f32 %v739_v13, %v740_v15 }
 0x460   : > { %v748_v19 = vmax.f32 %v746_v16, %v747_v17 }
 0x461   : > { %v742_v20 = vrot.slane %v741_v18, 2 }
 0x462   : > { %v749_v21 = vrot.slane %v748_v19, 2 }
 0x463   : > { %v743_v22 = vmax.f32 %v741_v18, %v742_v20 }
 0x464   : > { %v750_v23 = vmax.f32 %v748_v19, %v749_v21 }
 0x465   : > { %v744_v24 = vrot.slane %v743_v22, 1 }
 0x466   : > { %v751_v25 = vrot.slane %v750_v23, 1 }
 0x467   : > { %v745_v26 = vmax.f32 %v743_v22, %v744_v24 }
 0x468   : > { %v752_v27 = vmax.f32 %v750_v23, %v751_v25 }
 0x469   : > { %v753_v28 = vsub.f32 %v737_v9, %v745_v26 }
 0x46a   : > { %v754_v29 = vsub.f32 %v738_v11, %v752_v27 }
 0x46b   : > { %v755_v30 = vmul.f32 1.442695, %v753_v28 }
 0x46c   : > { %v757_v31 = vmul.f32 1.442695, %v754_v29 }
 0x46d   : > { %1167 = vpow2.f32 %v755_v30 }
 0x46e   : > { %1169 = vpow2.f32 %v757_v31 }
 0x477   : > { %v1168_v32 = vpop.eup %1167 }
 0x478   : > { %v1170_v33 = vpop.eup %1169  ;;  %v759_v34 = vsel %vm329_vm2, %v1168_v32, 0.0 }
 0x479   : > { %v760_v35 = vrot.slane %v759_v34, 4  ;;  %v766_v36 = vsel %vm329_vm2, %v1170_v33, 0.0 }
 0x47a   : > { %v767_v37 = vrot.slane %v766_v36, 4 }
 0x47b   : > { %v761_v38 = vadd.f32 %v760_v35, %v759_v34 }
 0x47c   : > { %v768_v55 = vadd.f32 %v767_v37, %v766_v36 }
 0x47d   : > { %v762_v56 = vrot.slane %v761_v38, 2 }
 0x47e   : > { %v769_v58 = vrot.slane %v768_v55, 2 }
 0x47f   : > { %v763_v60 = vadd.f32 %v762_v56, %v761_v38 }
 0x480   : > { %v770_v61 = vadd.f32 %v769_v58, %v768_v55 }
 0x481   : > { %v764_v62 = vrot.slane %v763_v60, 1 }
 0x482   : > { %v771_v57 = vrot.slane %v770_v61, 1 }
 0x483   : > { %v765_v59 = vadd.f32 %v764_v62, %v763_v60 }
 0x484   : > { %v772_v63 = vadd.f32 %v771_v57, %v770_v61 }
 0x485   : > { %1171 = vrcp.f32 %v765_v59 }
 0x486   : > { %1173 = vrcp.f32 %v772_v63 }
 0x48f   : > { %v1172_v0 = vpop.eup %1171 }
 0x490   : > { %v1174_v1 = vpop.eup %1173  ;;  %v775_v2 = vmul.f32 %v1172_v0, %v1168_v32 }
 0x491   : > { %v776_v3 = vmul.f32 %v1174_v1, %v1170_v33 }
 0x492   : > { %v777_v6 = vpack.c.bf16 %v775_v2, %v775_v2 }
 0x493   : > { %v778_v4 = vpack.c.bf16 %v776_v3, %v776_v3 }
 0x495   : > { %811 = vmatprep.mubr.bf16.mxu0 %v778_v4 }
 0x496   : > { %812 = vmatmul.mubr.bf16.vlgmr.msra.gmra.mrb[8].mxu0 %v777_v6 }
 0x569   : > { %v813_v8 = vpop.f32.mrb[8].mxu0 }
 0x56a   : > { %v820_v5 = vadd.f32 %v813_v8, %v1568_v41  ;;  %v815_v40 = vpop.f32.mrb[9].mxu0 }
 0x56b   : > { %v821_v44 = vadd.f32 %v815_v40, %v1570_v43  ;;  %v817_v45 = vpop.f32.mrb[10].mxu0 }
 0x56c   : > { %v822_v46 = vsel %vm329_vm2, %v820_v5, -inf  ;;  %v818_v39 = vpop.f32.mrb[11].mxu0 }
 0x56d   : > { %v823_v42 = vrot.slane %v822_v46, 4  ;;  %v829_v47 = vsel %vm329_vm2, %v821_v44, -inf }
 0x56e   : > { %v830_v48 = vrot.slane %v829_v47, 4 }
 0x56f   : > { %v824_v49 = vmax.f32 %v822_v46, %v823_v42 }
 0x570   : > { %v831_v50 = vmax.f32 %v829_v47, %v830_v48 }
 0x571   : > { %v825_v51 = vrot.slane %v824_v49, 2 }
 0x572   : > { %v832_v52 = vrot.slane %v831_v50, 2 }
 0x573   : > { %v826_v53 = vmax.f32 %v824_v49, %v825_v51 }
 0x574   : > { %v833_v54 = vmax.f32 %v831_v50, %v832_v52 }
 0x575   : > { %v827_v7 = vrot.slane %v826_v53, 1 }
 0x576   : > { %v834_v9 = vrot.slane %v833_v54, 1 }
 0x577   : > { %v828_v10 = vmax.f32 %v826_v53, %v827_v7 }
 0x578   : > { %v835_v11 = vmax.f32 %v833_v54, %v834_v9 }
 0x579   : > { %v836_v12 = vsub.f32 %v820_v5, %v828_v10 }
 0x57a   : > { %v837_v13 = vsub.f32 %v821_v44, %v835_v11 }
 0x57b   : > { %v838_v14 = vmul.f32 1.442695, %v836_v12 }
 0x57c   : > { %v840_v15 = vmul.f32 1.442695, %v837_v13 }
 0x57d   : > { %1175 = vpow2.f32 %v838_v14 }
 0x57e   : > { %1177 = vpow2.f32 %v840_v15 }
 0x587   : > { %v1176_v16 = vpop.eup %1175 }
 0x588   : > { %v1178_v17 = vpop.eup %1177  ;;  %v842_v18 = vsel %vm329_vm2, %v1176_v16, 0.0 }
 0x589   : > { %v843_v19 = vrot.slane %v842_v18, 4  ;;  %v849_v20 = vsel %vm329_vm2, %v1178_v17, 0.0 }
 0x58a   : > { %v850_v21 = vrot.slane %v849_v20, 4 }
 0x58b   : > { %v844_v22 = vadd.f32 %v843_v19, %v842_v18 }
 0x58c   : > { %v851_v23 = vadd.f32 %v850_v21, %v849_v20 }
 0x58d   : > { %v845_v24 = vrot.slane %v844_v22, 2 }
 0x58e   : > { %v852_v25 = vrot.slane %v851_v23, 2 }
 0x58f   : > { %v846_v26 = vadd.f32 %v845_v24, %v844_v22 }
 0x590   : > { %v853_v27 = vadd.f32 %v852_v25, %v851_v23 }
 0x591   : > { %v847_v28 = vrot.slane %v846_v26, 1 }
 0x592   : > { %v854_v29 = vrot.slane %v853_v27, 1 }
 0x593   : > { %v848_v30 = vadd.f32 %v847_v28, %v846_v26 }
 0x594   : > { %v855_v31 = vadd.f32 %v854_v29, %v853_v27 }
 0x595   : > { %1179 = vrcp.f32 %v848_v30 }
 0x596   : > { %1181 = vrcp.f32 %v855_v31 }
 0x59f   : > { %v1180_v32 = vpop.eup %1179 }
 0x5a0   : > { %v1182_v33 = vpop.eup %1181  ;;  %v858_v34 = vmul.f32 %v1180_v32, %v1176_v16 }
 0x5a1   : > { %v859_v35 = vmul.f32 %v1182_v33, %v1178_v17 }
 0x5a2   : > { %v860_v37 = vpack.c.bf16 %v858_v34, %v858_v34 }
 0x5a3   : > { %v861_v36 = vpack.c.bf16 %v859_v35, %v859_v35 }
 0x5a5   : > { %894 = vmatprep.mubr.bf16.mxu1 %v861_v36 }
 0x5a6   : > { %895 = vmatmul.mubr.bf16.vlgmr.msra.gmra.mrb[8].mxu1 %v860_v37 }
 0x679   : > { %v896_v38 = vpop.f32.mrb[8].mxu1 }
 0x67a   : > { %v903_v55 = vadd.f32 %v896_v38, %v1568_v41  ;;  %v898_v56 = vpop.f32.mrb[9].mxu1 }
 0x67b   : > { %v904_v58 = vadd.f32 %v898_v56, %v1570_v43  ;;  %v900_v60 = vpop.f32.mrb[10].mxu1 }
 0x67c   : > { %v901_v61 = vpop.f32.mrb[11].mxu1 }
 0x67d   : > { %v907_v62 = vcombine.low %v903_v55, %v904_v58 }
 0x67f   : > { %909 = vst [vmem:[%s230_s27] sm:$0x77] %v907_v62 }
 0x680 PF: > { %p15_p8 = scmp.ge.s32.totalorder %s1355_s25, 4   ;;  %s1734_s15 = smov %s1271_s16 }
 0x681   : > { %s1735_s16 = smov %s1275_s17  ;;  %s1736_s17 = smov %s1381_s14 }
 0x682   : > { %s1737_s18 = smov %s1355_s25  ;;  %17 = sbr.rel (!%p15_p8) target bundleno = 4 (0x4), region = 80 }
 0x689   :  { %931 = vsyncpa [#allocation3], 1 }
 0x68a   :  { %933 = vsyncpa [#allocation3 + $0x1], 1 }
 0x68b   :  { %934 = vsyncpa [#allocation5], 1 }

</bundles_post_ra>
